<compile_context>
chip_gen: v7x
topology: tpu7x:2x2x1
jax: 0.10.0
libtpu: 0.0.40
codegen_flags: <defaults>
</compile_context>

<pallas_src>
import functools

import jax
import jax.numpy as jnp
from jax.experimental import pallas as pl
from jax.experimental.pallas import tpu as pltpu

# TODO(synk): get_bookend_token() / get_log_probs_precision() are not
# available in-script; conventional sentinel values are used instead.
BOOKEND_TOKEN = -1.0
LOG_PROBS_PRECISION = -1.0e6

_HALF_LOG_2PI = 0.9189385332046727  # 0.5 * log(2*pi)


def _cdiv(a, b):
    return -(-a // b)


def _round_up(x, m):
    return _cdiv(x, m) * m


def _lgamma(x):
    """log Gamma(x) for x >= 0 via 6-step upward recurrence + Stirling series.

    lgamma(x) = lgamma(x + 6) - log(x (x+1)(x+2)(x+3)(x+4)(x+5))
    lgamma(y) ~ (y - 1/2) log y - y + log(2*pi)/2 + 1/(12 y) - 1/(360 y^3)

    The 6-term product is evaluated as two factors (~x^2 and ~x^4) whose logs
    are taken separately, so nothing overflows float32 until x ~ 4e9.
    x == 0 (bookend columns) yields +inf, which only ever reaches the
    *discarded* branch of a downstream jnp.where select.  Absolute error is
    ~1e-5, far inside the test tolerance.  Logs/reciprocal go to the EUP; the
    VALU work per element is ~2.5x smaller than the old Lanczos form.
    """
    u = x * (x + 5.0)                      # x (x+5)
    p1 = u * (u + 4.0)                     # x (x+1) (x+4) (x+5)
    p2 = u + 6.0                           # (x+2) (x+3)
    y = x + 6.0
    ry = pl.reciprocal(y, approx=True)
    series = ry * (1.0 / 12.0 - (1.0 / 360.0) * (ry * ry))
    return ((y - 0.5) * jnp.log(y) - y + _HALF_LOG_2PI + series
            - jnp.log(p1) - jnp.log(p2))


# ---------------------------------------------------------------------------
# Kernels
# ---------------------------------------------------------------------------
def _broadcast_kernel(params_ref, obs_ref, out_ref, colg_ref, *,
                      t_total, tile_r, lanes):
    # params_ref: (n_states, 4) f32 SMEM table: [fs, log ps, fs*log1p(-ps),
    #             lgamma(fs)] per state; row 0 is an unused bookend slot.
    # obs_ref:    (tile_r, lanes) f32 dense slab of observations (VMEM).
    # out_ref:    (tile_r, lanes) f32 output block for the current state.
    # colg_ref:   (tile_r, lanes) f32 VMEM scratch caching lgamma(1 + value)
    #             for the current row tile (filled at the first state step).
    i = pl.program_id(0)          # row tile   ("parallel")
    s = pl.program_id(1)          # state      ("arbitrary", innermost)
    value = obs_ref[...]

    @pl.when(s == 0)
    def _():
        # Once per row tile: cache the state-independent lgamma(1 + value)
        # and emit the bookend-state row (LOG_PROBS_PRECISION everywhere;
        # its two edge columns are fixed up below).
        colg_ref[...] = _lgamma(1.0 + value)
        out_ref[...] = jnp.full_like(value, LOG_PROBS_PRECISION)

    @pl.when(s > 0)
    def _():
        fs = params_ref[s, 0]
        log_ps = params_ref[s, 1]
        log_unnorm_c = params_ref[s, 2]     # fs * log1p(-ps)
        lgamma_fs = params_ref[s, 3]
        fv = fs + value
        log_norm = -_lgamma(fv) + colg_ref[...] + lgamma_fs
        # Torch-faithful exact-equality special case.
        log_norm = jnp.where(fv == 0.0, 0.0, log_norm)
        out_ref[...] = log_unnorm_c + value * log_ps - log_norm

    # Edge-column fixups (flat columns 0 and t_total-1) only run in the row
    # tiles that can contain them.
    last_tile = ((t_total - 1) // lanes) // tile_r      # static Python int

    @pl.when(jnp.logical_or(i == 0, i == last_tile))
    def _():
        r = jax.lax.broadcasted_iota(jnp.int32, (tile_r, lanes), 0)
        c = jax.lax.broadcasted_iota(jnp.int32, (tile_r, lanes), 1)
        flat = (i * tile_r + r) * lanes + c
        edge = jnp.logical_or(flat == 0, flat == t_total - 1)
        edge_val = jnp.where(s == 0, 0.0, LOG_PROBS_PRECISION)
        out_ref[...] = jnp.where(edge, edge_val, out_ref[...])


def _sequence_kernel(params_ref, obs_ref, idx_ref, out_ref, *, n_observable):
    # params_ref: (n_states, 4) f32 SMEM table (row 0 = bookend dummy).
    # obs_ref / idx_ref / out_ref: (tile_r, lanes) dense slabs.
    value = obs_ref[...]
    idx = idx_ref[...]

    # Fused gather: resolve the 4 per-timestep NB parameters with an
    # n_observable-way compare/select against the tiny SMEM table instead of
    # streaming four pre-gathered (rows, lanes) f32 arrays from HBM.
    fs = jnp.full_like(value, 1.0)
    log_ps = jnp.zeros_like(value)
    log_unnorm_c = jnp.zeros_like(value)
    lgamma_fs = jnp.zeros_like(value)
    for v in range(n_observable):
        m = idx == v
        fs = jnp.where(m, params_ref[v + 1, 0], fs)
        log_ps = jnp.where(m, params_ref[v + 1, 1], log_ps)
        log_unnorm_c = jnp.where(m, params_ref[v + 1, 2], log_unnorm_c)
        lgamma_fs = jnp.where(m, params_ref[v + 1, 3], lgamma_fs)

    fv = fs + value
    log_norm = -_lgamma(fv) + _lgamma(1.0 + value) + lgamma_fs
    log_norm = jnp.where(fv == 0.0, 0.0, log_norm)
    out_ref[...] = log_unnorm_c + value * log_ps - log_norm


# ---------------------------------------------------------------------------
# Module
# ---------------------------------------------------------------------------
class TranscriptEmission:
    """JAX/Pallas port of the torch TranscriptEmission forward pass."""

    def __init__(self, n_states, spots_total_transcripts=None,
                 baseline_exp=None, total_exp_read_depth=25):
        self.n_states = 1 + n_states
        # init_emission(), deterministic:
        k = 1.0 + jnp.arange(self.n_states - 1, dtype=jnp.float32)
        state_means = total_exp_read_depth * k
        state_frac_std = 2.0 * total_exp_read_depth * k
        state_frac_std = jnp.sqrt(state_frac_std) / state_frac_std
        self.state_log_means = jnp.log(state_means)
        self.state_log_frac_std = jnp.log(state_frac_std)
        # Unused by forward(); kept for interface parity.
        self.baseline_exp = baseline_exp
        self.spots_total_transcripts = spots_total_transcripts

    # ---- per-state derived NB parameters (O(n_states) plain-JAX glue) ------
    def _param_table(self):
        """(n_states, 4) f32: [fs, log(ps), fs*log1p(-ps), lgamma(fs)] per
        observable state, prefixed with a dummy bookend row (never read)."""
        means = jnp.exp(self.state_log_means)
        frac = jnp.exp(self.state_log_frac_std)
        var = means + (means * frac) ** 2.0
        ps = means / var
        rs = means * means / (var - means)
        fs = rs / ps - rs
        tbl = jnp.stack([fs,
                         jnp.log(ps),
                         fs * jnp.log1p(-ps),        # precision-safe log(1-ps)
                         jax.lax.lgamma(fs)], axis=1).astype(jnp.float32)
        dummy = jnp.array([[1.0, 0.0, 0.0, 0.0]], jnp.float32)
        return jnp.concatenate([dummy, tbl], axis=0)

    # ---- broadcast branch (states is None) ---------------------------------
    def _forward_broadcast(self, obs):
        t = obs.shape[0]
        n = self.n_states
        params = self._param_table()

        lanes = 512
        rows = max(1, _cdiv(t, lanes))
        # <=64 sublanes per block (128 KiB blocks); padding waste bounded by
        # <8 rows per row tile.
        n_row_tiles = max(_cdiv(rows, 64), 1)
        tile_r = _round_up(_cdiv(rows, n_row_tiles), 8)
        rows_pad = n_row_tiles * tile_r
        obs_p = jnp.pad(obs.astype(jnp.float32),
                        (0, rows_pad * lanes - t)).reshape(rows_pad, lanes)

        kernel = functools.partial(_broadcast_kernel, t_total=t,
                                   tile_r=tile_r, lanes=lanes)
        elems = rows_pad * lanes
        out = pl.pallas_call(
            kernel,
            out_shape=jax.ShapeDtypeStruct((n, rows_pad, lanes), jnp.float32),
            grid_spec=pltpu.PrefetchScalarGridSpec(
                num_scalar_prefetch=0,
                grid=(n_row_tiles, n),
                in_specs=[
                    pl.BlockSpec(memory_space=pltpu.MemorySpace.SMEM),
                    pl.BlockSpec((tile_r, lanes), lambda i, s: (i, 0)),
                ],
                out_specs=pl.BlockSpec((None, tile_r, lanes),
                                       lambda i, s: (s, i, 0)),
                scratch_shapes=[pltpu.VMEM((tile_r, lanes), jnp.float32)],
            ),
            compiler_params=pltpu.CompilerParams(
                dimension_semantics=("parallel", "arbitrary")),
            cost_estimate=pl.CostEstimate(
                flops=int(elems * (30 * (n - 1) + 30)),
                transcendentals=int(elems * (4 * (n - 1) + 4)),
                bytes_accessed=int(4 * (elems + n * elems + 4 * n))),
        )(params, obs_p)
        return out.reshape(n, rows_pad * lanes)[:, :t]

    # ---- per-sequence branch (states given) --------------------------------
    def _forward_states(self, obs, states):
        l = obs.shape[0] - 2
        params = self._param_table()
        idx = states[1:-1].astype(jnp.int32) - 1

        lanes = 512
        rows = max(1, _cdiv(l, lanes))
        # <=128 sublanes per block (256 KiB blocks).
        n_row_tiles = max(_cdiv(rows, 128), 1)
        tile_r = _round_up(_cdiv(rows, n_row_tiles), 8)
        rows_pad = n_row_tiles * tile_r
        total = rows_pad * lanes

        obs_in = jnp.pad(obs[1:-1].astype(jnp.float32),
                         (0, total - l)).reshape(rows_pad, lanes)
        idx_in = jnp.pad(idx, (0, total - l)).reshape(rows_pad, lanes)

        blk = pl.BlockSpec((tile_r, lanes), lambda i: (i, 0))
        # TODO(synk): on v5e, pipeline_mode=pl.Buffered(3) on the streamed
        # inputs could hide residual DMA latency if it is still exposed.
        nb = pl.pallas_call(
            functools.partial(_sequence_kernel,
                              n_observable=self.n_states - 1),
            out_shape=jax.ShapeDtypeStruct((rows_pad, lanes), jnp.float32),
            grid_spec=pltpu.PrefetchScalarGridSpec(
                num_scalar_prefetch=0,
                grid=(n_row_tiles,),
                in_specs=[pl.BlockSpec(memory_space=pltpu.MemorySpace.SMEM),
                          blk, blk],
                out_specs=blk,
            ),
            compiler_params=pltpu.CompilerParams(
                dimension_semantics=("parallel",)),
            cost_estimate=pl.CostEstimate(
                flops=int(80 * total),
                transcendentals=int(9 * total),
                bytes_accessed=int(4 * 3 * total)),
        )(params, obs_in, idx_in)

        inner = nb.reshape(total)[:l]
        token = jnp.zeros((1,), jnp.float32)   # bookend_sequence(..., token=0.0)
        return jnp.concatenate([token, inner, token])

    def forward(self, obs, states=None):
        obs = jnp.atleast_1d(obs)
        if states is None:
            return self._forward_broadcast(obs)
        return self._forward_states(obs, states)

    def log_emission(self, state, obs):
        return self.forward(obs, state)


# ---- pure-JAX reference (uses lax.lgamma) for correctness checking ---------
def _reference_forward(mod, obs, states=None):
    def nb_log_prob(fs, ps, value):
        log_unnorm = fs * jnp.log1p(-ps) + value * jnp.log(ps)
        log_norm = (-jax.lax.lgamma(fs + value) + jax.lax.lgamma(1.0 + value)
                    + jax.lax.lgamma(fs))
        log_norm = jnp.where(fs + value == 0.0, 0.0, log_norm)
        return log_unnorm - log_norm

    means = jnp.exp(mod.state_log_means)
    frac = jnp.exp(mod.state_log_frac_std)
    var = means + (means * frac) ** 2.0
    ps = means / var
    rs = means * means / (var - means)
    fs = rs / ps - rs
    obs = obs.astype(jnp.float32)
    if states is None:
        res = nb_log_prob(fs[:, None], ps[:, None], obs[None, :])
        res = res.at[:, 0].set(LOG_PROBS_PRECISION)
        res = res.at[:, -1].set(LOG_PROBS_PRECISION)
        bookend = jnp.full((obs.shape[0],), LOG_PROBS_PRECISION, jnp.float32)
        bookend = bookend.at[0].set(0.0).at[-1].set(0.0)
        return jnp.concatenate([bookend[None, :], res], axis=0)
    observable = states[1:-1].astype(jnp.int32) - 1
    inner = nb_log_prob(fs[observable], ps[observable], obs[1:-1])
    z = jnp.zeros((1,), jnp.float32)
    return jnp.concatenate([z, inner, z])


if __name__ == "__main__":
    key = jax.random.PRNGKey(0)
    n_observable_states = 4      # module gets n_states=4 -> internal n_states=5
    seq_len = 16

    mod = TranscriptEmission(n_states=n_observable_states)

    k_obs, k_states = jax.random.split(key)
    counts = jax.random.randint(k_obs, (seq_len - 2,), 0, 60).astype(jnp.float32)
    obs = jnp.concatenate([jnp.array([BOOKEND_TOKEN], jnp.float32),
                           counts,
                           jnp.array([BOOKEND_TOKEN], jnp.float32)])
    states_inner = jax.random.randint(k_states, (seq_len - 2,), 1,
                                      n_observable_states + 1).astype(jnp.int32)
    states = jnp.concatenate([jnp.array([int(BOOKEND_TOKEN)], jnp.int32),
                              states_inner,
                              jnp.array([int(BOOKEND_TOKEN)], jnp.int32)])

    out_broadcast = jax.block_until_ready(mod.forward(obs))            # (5, 16)
    out_sequence = jax.block_until_ready(mod.forward(obs, states))     # (16,)

    assert out_broadcast.shape == (mod.n_states, seq_len)
    assert out_sequence.shape == (seq_len,)

    ref_b = _reference_forward(mod, obs)
    ref_s = _reference_forward(mod, obs, states)
    ok_b = bool(jnp.allclose(out_broadcast, ref_b, rtol=1e-3, atol=5e-2))
    ok_s = bool(jnp.allclose(out_sequence, ref_s, rtol=1e-3, atol=5e-2))
    if not (ok_b and ok_s):
        raise AssertionError("Pallas kernel output does not match JAX reference")

    print("KERNEL_OK")
</pallas_src>

<mosaic_0001>
module attributes {stable_mosaic.version = 11 : i64} {
  func.func @_broadcast_kernel(%arg0: i32, %arg1: i32, %arg2: memref<5x4xf32, #tpu.memory_space<smem>>, %arg3: memref<8x512xf32, #tpu.memory_space<vmem>>, %arg4: memref<1x8x512xf32, #tpu.memory_space<vmem>>, %arg5: memref<8x512xf32, #tpu.memory_space<vmem>>) attributes {dimension_semantics = [#tpu.dimension_semantics<parallel>, #tpu.dimension_semantics<arbitrary>], iteration_bounds = array<i64: 1, 5>, scalar_prefetch = 0 : i64, scratch_operands = 1 : i64, tpu.core_type = #tpu.core_type<tc>, window_params = [{transform_indices = @transform_0, window_bounds = array<i64: 5, 4>}, {transform_indices = @transform_1, window_bounds = array<i64: 8, 512>}, {transform_indices = @transform_2, window_bounds = array<i64: 1, 8, 512>}]} {
    %c0 = arith.constant 0 : index
    %c0_0 = arith.constant 0 : index
    %0 = vector.load %arg3[%c0, %c0_0] : memref<8x512xf32, #tpu.memory_space<vmem>>, vector<8x512xf32>
    %c0_i32 = arith.constant 0 : i32
    %1 = arith.cmpi eq, %arg1, %c0_i32 : i32
    %2 = arith.extui %1 : i1 to i32
    %c0_i32_1 = arith.constant 0 : i32
    %3 = arith.cmpi ne, %2, %c0_i32_1 : i32
    scf.if %3 {
      %cst = arith.constant 1.000000e+00 : f32
      %12 = vector.broadcast %cst : f32 to vector<8x512xf32>
      %13 = arith.addf %12, %0 : vector<8x512xf32>
      %cst_7 = arith.constant 5.000000e+00 : f32
      %14 = vector.broadcast %cst_7 : f32 to vector<8x512xf32>
      %15 = arith.addf %13, %14 : vector<8x512xf32>
      %16 = arith.mulf %13, %15 : vector<8x512xf32>
      %cst_8 = arith.constant 4.000000e+00 : f32
      %17 = vector.broadcast %cst_8 : f32 to vector<8x512xf32>
      %18 = arith.addf %16, %17 : vector<8x512xf32>
      %19 = arith.mulf %16, %18 : vector<8x512xf32>
      %cst_9 = arith.constant 6.000000e+00 : f32
      %20 = vector.broadcast %cst_9 : f32 to vector<8x512xf32>
      %21 = arith.addf %16, %20 : vector<8x512xf32>
      %cst_10 = arith.constant 6.000000e+00 : f32
      %22 = vector.broadcast %cst_10 : f32 to vector<8x512xf32>
      %23 = arith.addf %13, %22 : vector<8x512xf32>
      %24 = tpu.reciprocal %23 {approx = true} : vector<8x512xf32> -> vector<8x512xf32>
      %25 = arith.mulf %24, %24 : vector<8x512xf32>
      %cst_11 = arith.constant 0.00277777785 : f32
      %26 = vector.broadcast %cst_11 : f32 to vector<8x512xf32>
      %27 = arith.mulf %26, %25 : vector<8x512xf32>
      %cst_12 = arith.constant 0.0833333358 : f32
      %28 = vector.broadcast %cst_12 : f32 to vector<8x512xf32>
      %29 = arith.subf %28, %27 : vector<8x512xf32>
      %30 = arith.mulf %24, %29 : vector<8x512xf32>
      %cst_13 = arith.constant 5.000000e-01 : f32
      %31 = vector.broadcast %cst_13 : f32 to vector<8x512xf32>
      %32 = arith.subf %23, %31 : vector<8x512xf32>
      %33 = math.log %23 : vector<8x512xf32>
      %34 = arith.mulf %32, %33 : vector<8x512xf32>
      %35 = arith.subf %34, %23 : vector<8x512xf32>
      %cst_14 = arith.constant 0.918938517 : f32
      %36 = vector.broadcast %cst_14 : f32 to vector<8x512xf32>
      %37 = arith.addf %35, %36 : vector<8x512xf32>
      %38 = arith.addf %37, %30 : vector<8x512xf32>
      %39 = math.log %19 : vector<8x512xf32>
      %40 = arith.subf %38, %39 : vector<8x512xf32>
      %41 = math.log %21 : vector<8x512xf32>
      %42 = arith.subf %40, %41 : vector<8x512xf32>
      %c0_15 = arith.constant 0 : index
      %c0_16 = arith.constant 0 : index
      %43 = vector.load %arg5[%c0_15, %c0_16] : memref<8x512xf32, #tpu.memory_space<vmem>>, vector<8x512xf32>
      tpu.vector_store %arg5[%c0_15, %c0_16], %42 {strides = array<i32>} : memref<8x512xf32, #tpu.memory_space<vmem>>, vector<8x512xf32>,
      %cst_17 = arith.constant -1.000000e+06 : f32
      %44 = vector.broadcast %cst_17 : f32 to vector<8x512xf32>
      %c0_18 = arith.constant 0 : index
      %c0_19 = arith.constant 0 : index
      %c0_20 = arith.constant 0 : index
      %45 = vector.load %arg4[%c0_18, %c0_19, %c0_20] : memref<1x8x512xf32, #tpu.memory_space<vmem>>, vector<1x8x512xf32>
      %46 = vector.shape_cast %45 : vector<1x8x512xf32> to vector<8x512xf32>
      %47 = vector.shape_cast %44 : vector<8x512xf32> to vector<1x8x512xf32>
      tpu.vector_store %arg4[%c0_18, %c0_19, %c0_20], %47 {strides = array<i32>} : memref<1x8x512xf32, #tpu.memory_space<vmem>>, vector<1x8x512xf32>,
    } else {
    }
    %c0_i32_2 = arith.constant 0 : i32
    %4 = arith.cmpi sgt, %arg1, %c0_i32_2 : i32
    %5 = arith.extui %4 : i1 to i32
    %c0_i32_3 = arith.constant 0 : i32
    %6 = arith.cmpi ne, %5, %c0_i32_3 : i32
    scf.if %6 {
      %12 = arith.index_cast %arg1 : i32 to index
      %c0_7 = arith.constant 0 : index
      %13 = memref.load %arg2[%12, %c0_7] : memref<5x4xf32, #tpu.memory_space<smem>>
      %14 = arith.index_cast %arg1 : i32 to index
      %c1 = arith.constant 1 : index
      %15 = memref.load %arg2[%14, %c1] : memref<5x4xf32, #tpu.memory_space<smem>>
      %16 = arith.index_cast %arg1 : i32 to index
      %c2 = arith.constant 2 : index
      %17 = memref.load %arg2[%16, %c2] : memref<5x4xf32, #tpu.memory_space<smem>>
      %18 = arith.index_cast %arg1 : i32 to index
      %c3 = arith.constant 3 : index
      %19 = memref.load %arg2[%18, %c3] : memref<5x4xf32, #tpu.memory_space<smem>>
      %20 = vector.broadcast %13 : f32 to vector<8x512xf32>
      %21 = arith.addf %20, %0 : vector<8x512xf32>
      %cst = arith.constant 5.000000e+00 : f32
      %22 = vector.broadcast %cst : f32 to vector<8x512xf32>
      %23 = arith.addf %21, %22 : vector<8x512xf32>
      %24 = arith.mulf %21, %23 : vector<8x512xf32>
      %cst_8 = arith.constant 4.000000e+00 : f32
      %25 = vector.broadcast %cst_8 : f32 to vector<8x512xf32>
      %26 = arith.addf %24, %25 : vector<8x512xf32>
      %27 = arith.mulf %24, %26 : vector<8x512xf32>
      %cst_9 = arith.constant 6.000000e+00 : f32
      %28 = vector.broadcast %cst_9 : f32 to vector<8x512xf32>
      %29 = arith.addf %24, %28 : vector<8x512xf32>
      %cst_10 = arith.constant 6.000000e+00 : f32
      %30 = vector.broadcast %cst_10 : f32 to vector<8x512xf32>
      %31 = arith.addf %21, %30 : vector<8x512xf32>
      %32 = tpu.reciprocal %31 {approx = true} : vector<8x512xf32> -> vector<8x512xf32>
      %33 = arith.mulf %32, %32 : vector<8x512xf32>
      %cst_11 = arith.constant 0.00277777785 : f32
      %34 = vector.broadcast %cst_11 : f32 to vector<8x512xf32>
      %35 = arith.mulf %34, %33 : vector<8x512xf32>
      %cst_12 = arith.constant 0.0833333358 : f32
      %36 = vector.broadcast %cst_12 : f32 to vector<8x512xf32>
      %37 = arith.subf %36, %35 : vector<8x512xf32>
      %38 = arith.mulf %32, %37 : vector<8x512xf32>
      %cst_13 = arith.constant 5.000000e-01 : f32
      %39 = vector.broadcast %cst_13 : f32 to vector<8x512xf32>
      %40 = arith.subf %31, %39 : vector<8x512xf32>
      %41 = math.log %31 : vector<8x512xf32>
      %42 = arith.mulf %40, %41 : vector<8x512xf32>
      %43 = arith.subf %42, %31 : vector<8x512xf32>
      %cst_14 = arith.constant 0.918938517 : f32
      %44 = vector.broadcast %cst_14 : f32 to vector<8x512xf32>
      %45 = arith.addf %43, %44 : vector<8x512xf32>
      %46 = arith.addf %45, %38 : vector<8x512xf32>
      %47 = math.log %27 : vector<8x512xf32>
      %48 = arith.subf %46, %47 : vector<8x512xf32>
      %49 = math.log %29 : vector<8x512xf32>
      %50 = arith.subf %48, %49 : vector<8x512xf32>
      %cst_15 = arith.constant 0.000000e+00 : f32
      %51 = vector.broadcast %cst_15 : f32 to vector<8x512xf32>
      %52 = arith.subf %51, %50 : vector<8x512xf32>
      %c0_16 = arith.constant 0 : index
      %c0_17 = arith.constant 0 : index
      %53 = vector.load %arg5[%c0_16, %c0_17] : memref<8x512xf32, #tpu.memory_space<vmem>>, vector<8x512xf32>
      %54 = arith.addf %52, %53 : vector<8x512xf32>
      %55 = vector.broadcast %19 : f32 to vector<8x512xf32>
      %56 = arith.addf %54, %55 : vector<8x512xf32>
      %cst_18 = arith.constant 0.000000e+00 : f32
      %57 = vector.broadcast %cst_18 : f32 to vector<8x512xf32>
      %58 = arith.cmpf oeq, %21, %57 : vector<8x512xf32>
      %cst_19 = arith.constant 0.000000e+00 : f32
      %59 = vector.broadcast %cst_19 : f32 to vector<8x512xf32>
      %60 = arith.select %58, %59, %56 : vector<8x512xi1>, vector<8x512xf32>
      %61 = vector.broadcast %15 : f32 to vector<8x512xf32>
      %62 = arith.mulf %0, %61 : vector<8x512xf32>
      %63 = vector.broadcast %17 : f32 to vector<8x512xf32>
      %64 = arith.addf %63, %62 : vector<8x512xf32>
      %65 = arith.subf %64, %60 : vector<8x512xf32>
      %c0_20 = arith.constant 0 : index
      %c0_21 = arith.constant 0 : index
      %c0_22 = arith.constant 0 : index
      %66 = vector.load %arg4[%c0_20, %c0_21, %c0_22] : memref<1x8x512xf32, #tpu.memory_space<vmem>>, vector<1x8x512xf32>
      %67 = vector.shape_cast %66 : vector<1x8x512xf32> to vector<8x512xf32>
      %68 = vector.shape_cast %65 : vector<8x512xf32> to vector<1x8x512xf32>
      tpu.vector_store %arg4[%c0_20, %c0_21, %c0_22], %68 {strides = array<i32>} : memref<1x8x512xf32, #tpu.memory_space<vmem>>, vector<1x8x512xf32>,
    } else {
    }
    %c0_i32_4 = arith.constant 0 : i32
    %7 = arith.cmpi eq, %arg0, %c0_i32_4 : i32
    %c0_i32_5 = arith.constant 0 : i32
    %8 = arith.cmpi eq, %arg0, %c0_i32_5 : i32
    %9 = arith.ori %7, %8 : i1
    %10 = arith.extui %9 : i1 to i32
    %c0_i32_6 = arith.constant 0 : i32
    %11 = arith.cmpi ne, %10, %c0_i32_6 : i32
    scf.if %11 {
      %12 = tpu.iota {dimensions = array<i32: 0>} : vector<8x512xi32>
      %13 = tpu.iota {dimensions = array<i32: 1>} : vector<8x512xi32>
      %c8_i32 = arith.constant 8 : i32
      %14 = arith.muli %arg0, %c8_i32 : i32
      %15 = vector.broadcast %14 : i32 to vector<8x512xi32>
      %16 = arith.addi %15, %12 : vector<8x512xi32>
      %c512_i32 = arith.constant 512 : i32
      %17 = vector.broadcast %c512_i32 : i32 to vector<8x512xi32>
      %18 = arith.muli %16, %17 : vector<8x512xi32>
      %19 = arith.addi %18, %13 : vector<8x512xi32>
      %c0_i32_7 = arith.constant 0 : i32
      %20 = vector.broadcast %c0_i32_7 : i32 to vector<8x512xi32>
      %21 = arith.cmpi eq, %19, %20 : vector<8x512xi32>
      %c15_i32 = arith.constant 15 : i32
      %22 = vector.broadcast %c15_i32 : i32 to vector<8x512xi32>
      %23 = arith.cmpi eq, %19, %22 : vector<8x512xi32>
      %24 = arith.ori %21, %23 : vector<8x512xi1>
      %c0_i32_8 = arith.constant 0 : i32
      %25 = arith.cmpi eq, %arg1, %c0_i32_8 : i32
      %cst = arith.constant 0.000000e+00 : f32
      %cst_9 = arith.constant -1.000000e+06 : f32
      %26 = arith.select %25, %cst, %cst_9 : f32
      %c0_10 = arith.constant 0 : index
      %c0_11 = arith.constant 0 : index
      %c0_12 = arith.constant 0 : index
      %27 = vector.load %arg4[%c0_10, %c0_11, %c0_12] : memref<1x8x512xf32, #tpu.memory_space<vmem>>, vector<1x8x512xf32>
      %28 = vector.shape_cast %27 : vector<1x8x512xf32> to vector<8x512xf32>
      %29 = vector.broadcast %26 : f32 to vector<8x512xf32>
      %30 = arith.select %24, %29, %28 : vector<8x512xi1>, vector<8x512xf32>
      %c0_13 = arith.constant 0 : index
      %c0_14 = arith.constant 0 : index
      %c0_15 = arith.constant 0 : index
      %31 = vector.load %arg4[%c0_13, %c0_14, %c0_15] : memref<1x8x512xf32, #tpu.memory_space<vmem>>, vector<1x8x512xf32>
      %32 = vector.shape_cast %31 : vector<1x8x512xf32> to vector<8x512xf32>
      %33 = vector.shape_cast %30 : vector<8x512xf32> to vector<1x8x512xf32>
      tpu.vector_store %arg4[%c0_13, %c0_14, %c0_15], %33 {strides = array<i32>} : memref<1x8x512xf32, #tpu.memory_space<vmem>>, vector<1x8x512xf32>,
    } else {
    }
    return
  }
  func.func @transform_0(%arg0: i32, %arg1: i32) -> (i32, i32) {
    %c0_i32 = arith.constant 0 : i32
    %c0_i32_0 = arith.constant 0 : i32
    %c0_i32_1 = arith.constant 0 : i32
    return %c0_i32, %c0_i32_0 : i32, i32
  }
  func.func @transform_1(%arg0: i32, %arg1: i32) -> (i32, i32) {
    %c0_i32 = arith.constant 0 : i32
    %c0_i32_0 = arith.constant 0 : i32
    return %arg0, %c0_i32 : i32, i32
  }
  func.func @transform_2(%arg0: i32, %arg1: i32) -> (i32, i32, i32) {
    %c0_i32 = arith.constant 0 : i32
    %c0_i32_0 = arith.constant 0 : i32
    return %arg1, %arg0, %c0_i32 : i32, i32, i32
  }
}

</mosaic_0001>

<bundles_post_ra>
// kernel: tpu_custom_call.1
= control target key start
LH: loop header
LB: loop body
LE: loop exit
PB: predicated region body
PF: predicated region fallthrough
CT: control target
= control target key end

     0   :  { %7 = vsyncpa [#allocation6], 0  ;;  %s1218_s0 = inlined_call_operand.vmem [shape: f32[5,4], index: 0, kind: input, shape index: {}]   ;;  %s1219_s1 = inlined_call_operand.hbm [shape: f32[8,512], index: 1, kind: input, shape index: {}]   ;;  %s1220_s2 = inlined_call_operand.hbm [shape: f32[5,8,512], index: 2, kind: output, shape index: {}]  }
   0x1   :  { %8 = vsyncpa [#allocation4], 0 }
   0x2   :  { %9 = vsyncpa [#allocation5], 0 }
   0x3   :  { %11 = vsyncpa [#allocation5 + $0x1], 0  ;;  %s906_s9 = smov 0   ;;  %s908_s10 = smov 0  }
   0x4   :  { %s910_s11 = smov 0   ;;  %s912_s12 = smov 0  }
   0x5   :  { %s914_s13 = smov 0   ;;  %s916_s14 = smov 0  }
   0x6 LB: > { %s589_s15 = sadd.s32 4294967295, %s885_s14   ;;  %s590_s16 = sadd.s32 4294967294, %s885_s14   ;;  %s885_s14 = sphi %s916_s14, %s17_s14   ;;  %s881_s13 = sphi %s914_s13, %s1233_s13   ;;  %s877_s12 = sphi %s912_s12, %s1232_s12   ;;  %s873_s11 = sphi %s910_s11, %s1231_s11   ;;  %s869_s10 = sphi %s908_s10, %s1230_s10   ;;  %s865_s9 = sphi %s906_s9, %s1229_s9  }
   0x7   : > { %s26_s17 = sadd.s32 1, %s881_s13  ;;  %s85_s18 = sadd.s32 1, %s873_s11 }
   0x8   : > { %p27_p0 = scmp.ge.s32.totalorder %s26_s17, 5  ;;  %p95_p1 = scmp.ne.s32.totalorder %s873_s11, %s869_s10 }
   0x9   : > { %p96_p2 = scmp.eq.s32.totalorder %s589_s15, 4  ;;  %p101_p3 = scmp.ne.s32.totalorder %s869_s10, %s865_s9 }
   0xa   : > { %s1235_s17 = smov (%p27_p0, %s26_s17), 0  ;;  %p102_p5 = scmp.eq.s32.totalorder %s590_s16, 4 }
   0xb   : > { %p946_p4 = por %p96_p2, %p95_p1  ;;  %s80_s20 = ssub.s32 %s881_s13, %s1235_s17 }
   0xc   : > { %p591_p6 = scmp.ge.s32.totalorder %s885_s14, 1  ;;  %p83_p7 = scmp.eq.s32.totalorder %s80_s20, 0 }
   0xd   : > { %s1222_s19 = scalar_select %p946_p4, 1, 0 }
   0xe   : > { %p953_p8 = por %p102_p5, %p101_p3  ;;  %p109_p9 = scmp.lt.s32.totalorder %s885_s14, 6 }
   0xf   : > { %s959_s22 = scalar_select %p83_p7, %s873_s11, %s85_s18  }
  0x10   : > { %s1223_s21 = scalar_select %p953_p8, 1, 0 }
  0x11   : > { %p961_p10 = pnand %p591_p6, %p109_p9  ;;  %p965_p11 = scmp.eq.s32.totalorder %s589_s15, 0 }
  0x12   : > { %s122_s27 = sshll.u32 %s1218_s0, 4  ;;  %s887_s29 = smov [#allocation7]   ;;  %s123_s27 = int_to_ptr.vmem [resolvable:$true] %s122_s27 }
  0x13   : > { %p625_p12 = pneg %p961_p10  ;;  %s136_s30 = sshll.u32 %s887_s29, 4  ;;  %s980_s30 = int_to_ptr.vmem [resolvable:$true] %s136_s30 }
  0x14   : > { %s756_s3 = scalar_lea.vmem %s123_s27, 128  ;;  %p764_p5 = scmp.lt.s32.totalorder %s123_s27, %s123_s27 }
  0x15   : > { %p976_p13 = pnand %p965_p11, %p625_p12  ;;  %p757_p0 = scmp.ne.s32.totalorder %s123_s27, %s756_s3 }
  0x16   : > { %p765_p6 = scmp.lt.s32.totalorder %s756_s3, %s756_s3 }
  0x17   : > { %p758_p1 = pneg %p976_p13 }
  0x18   : > { %p766_p7 = por %p765_p6, %p764_p5 }
  0x19   : > { %p759_p2 = pnand %p758_p1, %p757_p0 }
  0x1b   : > { %p760_p3 = pneg %p759_p2 }
  0x1d   : > { %p767_p9 = pnand %p766_p7, %p760_p3 }
  0x1f   : > { %770 = shalt.err (!%p767_p9)
}
  0x20   : > { %s888_s4 = smov [#allocation3]   ;;  %s771_s7 = scalar_lea.hbm %s1219_s1, 512 }
  0x21   : > { %628 = dma.vmem_to_smem (!%p976_p13), %s123_s27, 128, %s888_s4, [#allocation6]  }
  0x22   : > { %p772_p12 = scmp.ne.s32.totalorder %s1219_s1, %s771_s7  ;;  %p778_p3 = scmp.lt.u32.totalorder %s771_s7, %s1219_s1 }
  0x24   : > { %p774_p0 = pnand %p772_p12, %p758_p1 }
  0x26   : > { %p775_p2 = pneg %p774_p0 }
  0x28   : > { %p780_p5 = pnand %p778_p3, %p775_p2 }
  0x2a   : > { %783 = shalt.err (!%p780_p5)
}
  0x2b   : > { %s784_s20 = scalar_lea.vmem %s980_s30, 512  ;;  %p792_p8 = scmp.lt.s32.totalorder %s980_s30, %s980_s30 }
  0x2c   : > { %p785_p6 = scmp.ne.s32.totalorder %s980_s30, %s784_s20  ;;  %p793_p12 = scmp.lt.s32.totalorder %s784_s20, %s784_s20 }
  0x2e   : > { %p787_p7 = pnand %p785_p6, %p758_p1  ;;  %p794_p0 = por %p793_p12, %p792_p8 }
  0x30   : > { %p788_p9 = pneg %p787_p7 }
  0x32   : > { %p795_p4 = pnand %p794_p0, %p788_p9 }
  0x34   : > { %798 = shalt.err (!%p795_p4)
}
  0x35   : > { %631 = dma.hbm_to_vmem [thread:$0]  (!%p976_p13), %s1219_s1, 512, %s980_s30, [#allocation4]  }
  0x36   : > { %149 = sbr.rel (%p961_p10) target bundleno = 200 (0xc8), region = 28 }
  0x3d   : > { %852 = dma.done.wait (%p965_p11), [#allocation6], 128  }
  0x3e   : > { %854 = vsyncadd (%p965_p11), [#allocation6], 4294967168 }
  0x3f   : > { %856 = dma.done.wait (%p965_p11), [#allocation4], 512  }
  0x40   : > { %858 = vsyncadd (%p965_p11), [#allocation4], 4294966784 }
  0x41   : > { %159 = sfence }
  0x42   : > { %s168_s27 = sand.u32 1, %s869_s10   ;;  %v1025_v0 = vld [vmem:[#allocation7] sm:$0xff]  ;;  %v1027_v1 = vld [vmem:[#allocation7 + $0x8] sm:$0xff]  ;;  %v1029_v2 = vld [vmem:[#allocation7 + $0x10] sm:$0xff]  ;;  %p175_p4 = scmp.eq.s32.totalorder %s877_s12, 0 }
  0x43   : > { %s597_s23 = sshll.u32 %s168_s27, 5  ;;  %v1034_v3 = vld [vmem:[#allocation7 + $0x18] sm:$0xff]  ;;  %p598_p8 = scmp.ne.s32.totalorder %s877_s12, 0 }
  0x44   : > { %s1036_s28 = scalar_lea.vmem [#allocation8], %s597_s23  ;;  %v179_v4 = vadd.f32 (!%p598_p8), 1.0, %v1025_v0  ;;  %v180_v5 = vadd.f32 (!%p598_p8), 1.0, %v1027_v1  ;;  %v181_v6 = vadd.f32 (!%p598_p8), 1.0, %v1029_v2  ;;  %v889_v10 = vmov (!%p598_p8), -1000000.0  }
  0x45   : > { %178 = sbr.rel (%p598_p8) target bundleno = 111 (0x6f), region = 40  ;;  %283 = vst [vmem:[%s1036_s28] sm:$0xff] (!%p598_p8), %v889_v10  ;;  %284 = vst [vmem:[%s1036_s28 + $0x8] sm:$0xff] (!%p598_p8), %v889_v10  ;;  %v182_v13 = vadd.f32 (!%p598_p8), 1.0, %v1034_v3 }
  0x46   : > { %v183_v7 = vadd.f32 (!%p598_p8), 5.0, %v179_v4  ;;  %v1042_v8 = vadd.f32 (!%p598_p8), 6.0, %v179_v4  ;;  %v184_v9 = vadd.f32 (!%p598_p8), 5.0, %v180_v5  ;;  %285 = vst [vmem:[%s1036_s28 + $0x10] sm:$0xff] (!%p598_p8), %v889_v10  ;;  %286 = vst [vmem:[%s1036_s28 + $0x18] sm:$0xff] (!%p598_p8), %v889_v10  ;;  %v1048_v11 = vadd.f32 (!%p598_p8), 6.0, %v180_v5 }
  0x47   : > { %v185_v12 = vadd.f32 (!%p598_p8), 5.0, %v181_v6  ;;  %v186_v17 = vadd.f32 (!%p598_p8), 5.0, %v182_v13  ;;  %v1055_v25 = vadd.f32 (!%p598_p8), 6.0, %v181_v6  ;;  %v1058_v29 = vadd.f32 (!%p598_p8), 6.0, %v182_v13 }
  0x48   : > { %v187_v14 = vmul.f32 (!%p598_p8), %v183_v7, %v179_v4  ;;  %692 = vrcp.f32 (!%p598_p8), %v1042_v8  ;;  %v188_v15 = vmul.f32 (!%p598_p8), %v184_v9, %v180_v5  ;;  %v599_v31 = vadd.f32 (!%p598_p8), -0.5, %v1042_v8 }
  0x49   : > { %694 = vlog2.f32 (!%p598_p8), %v1042_v8  ;;  %v189_v16 = vmul.f32 (!%p598_p8), %v185_v12, %v181_v6  ;;  %v190_v26 = vmul.f32 (!%p598_p8), %v186_v17, %v182_v13  ;;  %v600_v42 = vadd.f32 (!%p598_p8), -0.5, %v1048_v11 }
  0x4a   : > { %v191_v18 = vadd.f32 (!%p598_p8), 4.0, %v187_v14  ;;  %v199_v19 = vadd.f32 (!%p598_p8), 6.0, %v187_v14  ;;  %v192_v20 = vadd.f32 (!%p598_p8), 4.0, %v188_v15  ;;  %v200_v21 = vadd.f32 (!%p598_p8), 6.0, %v188_v15 }
  0x4b   : > { %696 = vrcp.f32 (!%p598_p8), %v1048_v11  ;;  %v193_v24 = vadd.f32 (!%p598_p8), 4.0, %v189_v16  ;;  %v194_v28 = vadd.f32 (!%p598_p8), 4.0, %v190_v26  ;;  %v201_v35 = vadd.f32 (!%p598_p8), 6.0, %v189_v16 }
  0x4c   : > { %v195_v22 = vmul.f32 %v191_v18, %v187_v14  ;;  %698 = vlog2.f32 %v199_v19  ;;  %v196_v23 = vmul.f32 %v192_v20, %v188_v15  ;;  %v202_v45 = vadd.f32 6.0, %v190_v26 }
  0x4d   : > { %700 = vlog2.f32 %v1048_v11  ;;  %v197_v27 = vmul.f32 %v193_v24, %v189_v16  ;;  %v198_v38 = vmul.f32 %v194_v28, %v190_v26  ;;  %v601_v59 = vadd.f32 -0.5, %v1055_v25 }
  0x4e   : > { %702 = vlog2.f32 %v195_v22  ;;  %v602_v15 = vadd.f32 -0.5, %v1058_v29 }
  0x4f   : > { %704 = vlog2.f32 %v196_v23 }
  0x50   : > { %706 = vlog2.f32 %v200_v21 }
  0x51   : > { %708 = vrcp.f32 %v1055_v25 }
  0x52   : > { %v693_v30 = vpop.eup %692  ;;  %710 = vlog2.f32 %v1055_v25 }
  0x53   : > { %v695_v32 = vpop.eup %694  ;;  %v211_v33 = vmul.f32 %v693_v30, %v693_v30  ;;  %712 = vlog2.f32 %v197_v27 }
  0x54   : > { %v232_v34 = vmul.f32 0.6931472, %v695_v32  ;;  %714 = vrcp.f32 %v1058_v29 }
  0x55   : > { %v697_v36 = vpop.eup %696  ;;  %v215_v37 = vmul.f32 0.0027777778, %v211_v33  ;;  %716 = vlog2.f32 %v1058_v29 }
  0x56   : > { %v699_v39 = vpop.eup %698  ;;  %v239_v40 = vmul.f32 %v599_v31, %v232_v34  ;;  %v212_v41 = vmul.f32 %v697_v36, %v697_v36  ;;  %718 = vlog2.f32 %v201_v35 }
  0x57   : > { %v701_v43 = vpop.eup %700  ;;  %v219_v44 = vsub.f32 0.083333336, %v215_v37  ;;  %720 = vlog2.f32 %v198_v38  ;;  %v268_v58 = vmul.f32 0.6931472, %v699_v39 }
  0x58   : > { %v703_v46 = vpop.eup %702  ;;  %v243_v47 = vsub.f32 %v239_v40, %v1042_v8  ;;  %v216_v48 = vmul.f32 0.0027777778, %v212_v41  ;;  %v234_v49 = vmul.f32 0.6931472, %v701_v43  ;;  %722 = vlog2.f32 %v202_v45 }
  0x59   : > { %v705_v50 = vpop.eup %704  ;;  %v223_v51 = vmul.f32 %v693_v30, %v219_v44  ;;  %v256_v54 = vmul.f32 0.6931472, %v703_v46 }
  0x5a   : > { %v707_v52 = vpop.eup %706  ;;  %v247_v53 = vadd.f32 0.9189385, %v243_v47  ;;  %v220_v55 = vsub.f32 0.083333336, %v216_v48  ;;  %v240_v56 = vmul.f32 %v600_v42, %v234_v49  ;;  %v258_v9 = vmul.f32 0.6931472, %v705_v50 }
  0x5b   : > { %v709_v57 = vpop.eup %708  ;;  %v270_v13 = vmul.f32 0.6931472, %v707_v52 }
  0x5c   : > { %v711_v60 = vpop.eup %710  ;;  %v251_v61 = vadd.f32 %v247_v53, %v223_v51  ;;  %v224_v62 = vmul.f32 %v697_v36, %v220_v55  ;;  %v244_v63 = vsub.f32 %v240_v56, %v1048_v11  ;;  %v213_v4 = vmul.f32 %v709_v57, %v709_v57 }
  0x5d   : > { %v236_v5 = vmul.f32 0.6931472, %v711_v60  ;;  %v713_v6 = vpop.eup %712 }
  0x5e   : > { %v263_v7 = vsub.f32 %v251_v61, %v256_v54  ;;  %v248_v8 = vadd.f32 0.9189385, %v244_v63  ;;  %v217_v10 = vmul.f32 0.0027777778, %v213_v4  ;;  %v715_v12 = vpop.eup %714  ;;  %v260_v30 = vmul.f32 0.6931472, %v713_v6 }
  0x5f   : > { %v241_v14 = vmul.f32 %v601_v59, %v236_v5  ;;  %v717_v16 = vpop.eup %716  ;;  %v214_v20 = vmul.f32 %v715_v12, %v715_v12 }
  0x60   : > { %v275_v17 = vsub.f32 %v263_v7, %v268_v58  ;;  %v252_v18 = vadd.f32 %v248_v8, %v224_v62  ;;  %v221_v19 = vsub.f32 0.083333336, %v217_v10  ;;  %v238_v11 = vmul.f32 0.6931472, %v717_v16  ;;  %v719_v22 = vpop.eup %718 }
  0x61   : > { %v245_v21 = vsub.f32 %v241_v14, %v1055_v25  ;;  %v218_v26 = vmul.f32 0.0027777778, %v214_v20  ;;  %v721_v27 = vpop.eup %720  ;;  %v272_v36 = vmul.f32 0.6931472, %v719_v22 }
  0x62   : > { %279 = vst [vmem:[#allocation2] sm:$0xff] %v275_v17  ;;  %v264_v23 = vsub.f32 %v252_v18, %v258_v9  ;;  %v225_v24 = vmul.f32 %v709_v57, %v221_v19  ;;  %v242_v31 = vmul.f32 %v602_v15, %v238_v11  ;;  %v723_v34 = vpop.eup %722  ;;  %v262_v40 = vmul.f32 0.6931472, %v721_v27 }
  0x63   : > { %v249_v28 = vadd.f32 0.9189385, %v245_v21  ;;  %v222_v33 = vsub.f32 0.083333336, %v218_v26  ;;  %v274_v43 = vmul.f32 0.6931472, %v723_v34 }
  0x64   : > { %v276_v32 = vsub.f32 %v264_v23, %v270_v13  ;;  %v246_v37 = vsub.f32 %v242_v31, %v1058_v29 }
  0x65   : > { %v253_v35 = vadd.f32 %v249_v28, %v225_v24  ;;  %v226_v38 = vmul.f32 %v715_v12, %v222_v33 }
  0x66   : > { %280 = vst [vmem:[#allocation2 + $0x8] sm:$0xff] %v276_v32  ;;  %v250_v39 = vadd.f32 0.9189385, %v246_v37 }
  0x67   : > { %v265_v25 = vsub.f32 %v253_v35, %v260_v30 }
  0x68   : > { %v254_v42 = vadd.f32 %v250_v39, %v226_v38 }
  0x69   : > { %v277_v41 = vsub.f32 %v265_v25, %v272_v36 }
  0x6a   : > { %v266_v44 = vsub.f32 %v254_v42, %v262_v40 }
  0x6b   : > { %281 = vst [vmem:[#allocation2 + $0x10] sm:$0xff] %v277_v41 }
  0x6c   : > { %v278_v45 = vsub.f32 %v266_v44, %v274_v43 }
  0x6e   : > { %282 = vst [vmem:[#allocation2 + $0x18] sm:$0xff] %v278_v45 }
  0x6f PF: > { %p603_p10 = scmp.le.s32.totalorder %s877_s12, 0 }
  0x70   : > { %s1073_s24 = sshll.u32 (!%p603_p10), %s877_s12, 7 }
  0x71   : > { %290 = sbr.rel (%p603_p10) target bundleno = 172 (0xac), region = 44  ;;  %s292_s29 = sld [smem:[#allocation3 + %s1073_s24]] (!%p603_p10) }
  0x72   : > { %s293_s30 = sadd.s32 (!%p603_p10), 1, %s1073_s24  ;;  %s295_s4 = sadd.s32 (!%p603_p10), 2, %s1073_s24 }
  0x73   : > { %s1116_s3 = sld [smem:[#allocation3 + %s293_s30]] (!%p603_p10)  ;;  %s297_s5 = sadd.s32 (!%p603_p10), 3, %s1073_s24 }
  0x74   : > { %s1124_s6 = sld [smem:[#allocation3 + %s295_s4]] (!%p603_p10) }
  0x75   : > { %s1128_s7 = sld [smem:[#allocation3 + %s297_s5]] (!%p603_p10) }
  0x77   : > { %v299_v29 = vstv (!%p603_p10), %s292_s29 }
  0x78   : > { %v1077_v46 = vadd.f32 %v299_v29, %v1025_v0  ;;  %v1080_v47 = vadd.f32 %v299_v29, %v1027_v1  ;;  %v1091_v52 = vadd.f32 %v299_v29, %v1029_v2  ;;  %v1105_v5 = vadd.f32 %v299_v29, %v1034_v3 }
  0x79   : > { %v1131_v44 = vstv %s1116_s3 }
  0x7a   : > { %v304_v48 = vadd.f32 5.0, %v1077_v46  ;;  %v1084_v49 = vadd.f32 6.0, %v1077_v46  ;;  %v305_v50 = vadd.f32 5.0, %v1080_v47  ;;  %v1088_v51 = vadd.f32 6.0, %v1080_v47 }
  0x7b   : > { %v306_v55 = vadd.f32 5.0, %v1091_v52  ;;  %v1102_v62 = vadd.f32 6.0, %v1091_v52  ;;  %v307_v8 = vadd.f32 5.0, %v1105_v5  ;;  %v1111_v9 = vadd.f32 6.0, %v1105_v5 }
  0x7c   : > { %v308_v53 = vmul.f32 %v304_v48, %v1077_v46  ;;  %724 = vrcp.f32 %v1084_v49  ;;  %v309_v54 = vmul.f32 %v305_v50, %v1080_v47  ;;  %v605_v12 = vadd.f32 -0.5, %v1084_v49 }
  0x7d   : > { %726 = vlog2.f32 %v1084_v49  ;;  %v310_v60 = vmul.f32 %v306_v55, %v1091_v52  ;;  %v311_v13 = vmul.f32 %v307_v8, %v1105_v5  ;;  %v606_v18 = vadd.f32 -0.5, %v1088_v51 }
  0x7e   : > { %v312_v56 = vadd.f32 4.0, %v308_v53  ;;  %v320_v57 = vadd.f32 6.0, %v308_v53  ;;  %728 = vrcp.f32 %v1088_v51  ;;  %v313_v58 = vadd.f32 4.0, %v309_v54 }
  0x7f   : > { %v321_v59 = vadd.f32 6.0, %v309_v54  ;;  %730 = vlog2.f32 %v1088_v51  ;;  %v314_v4 = vadd.f32 4.0, %v310_v60  ;;  %v322_v7 = vadd.f32 6.0, %v310_v60 }
  0x80   : > { %v316_v61 = vmul.f32 %v312_v56, %v308_v53  ;;  %732 = vlog2.f32 %v320_v57  ;;  %v317_v63 = vmul.f32 %v313_v58, %v309_v54  ;;  %v315_v19 = vadd.f32 4.0, %v311_v13 }
  0x81   : > { %734 = vlog2.f32 %v321_v59  ;;  %v318_v6 = vmul.f32 %v314_v4, %v310_v60  ;;  %v323_v27 = vadd.f32 6.0, %v311_v13  ;;  %v607_v38 = vadd.f32 -0.5, %v1102_v62 }
  0x82   : > { %736 = vlog2.f32 %v316_v61  ;;  %v319_v26 = vmul.f32 %v315_v19, %v311_v13  ;;  %v608_v57 = vadd.f32 -0.5, %v1111_v9  ;;  %v426_v4 = vmul.f32 %v1131_v44, %v1025_v0  ;;  %v405_v0 = vld [vmem:[#allocation2 + $0x8] sm:$0xff] }
  0x83   : > { %738 = vlog2.f32 %v317_v63  ;;  %vm417_vm0 = vcmp.eq.f32.partialorder %v1077_v46, 0.0  ;;  %vm418_vm1 = vcmp.eq.f32.partialorder %v1080_v47, 0.0  ;;  %v428_v46 = vmul.f32 %v1131_v44, %v1029_v2 }
  0x84   : > { %740 = vrcp.f32 %v1102_v62  ;;  %vm419_vm2 = vcmp.eq.f32.partialorder %v1091_v52, 0.0  ;;  %vm420_vm3 = vcmp.eq.f32.partialorder %v1105_v5, 0.0 }
  0x85   : > { %742 = vlog2.f32 %v1102_v62 }
  0x86   : > { %v725_v10 = vpop.eup %724  ;;  %744 = vlog2.f32 %v318_v6 }
  0x87   : > { %v727_v14 = vpop.eup %726  ;;  %v332_v15 = vmul.f32 %v725_v10, %v725_v10  ;;  %746 = vlog2.f32 %v322_v7 }
  0x88   : > { %v729_v16 = vpop.eup %728  ;;  %v353_v17 = vmul.f32 0.6931472, %v727_v14  ;;  %748 = vrcp.f32 %v1111_v9  ;;  %v404_v14 = vld [vmem:[#allocation2] sm:$0xff] }
  0x89   : > { %v731_v20 = vpop.eup %730  ;;  %v336_v21 = vmul.f32 0.0027777778, %v332_v15  ;;  %v333_v11 = vmul.f32 %v729_v16, %v729_v16  ;;  %750 = vlog2.f32 %v1111_v9  ;;  %v430_v15 = vstv %s1124_s6 }
  0x8a   : > { %v733_v22 = vpop.eup %732  ;;  %v360_v23 = vmul.f32 %v605_v12, %v353_v17  ;;  %v355_v24 = vmul.f32 0.6931472, %v731_v20  ;;  %752 = vlog2.f32 %v319_v26 }
  0x8b   : > { %v735_v28 = vpop.eup %734  ;;  %v340_v30 = vsub.f32 0.083333336, %v336_v21  ;;  %v337_v31 = vmul.f32 0.0027777778, %v333_v11  ;;  %754 = vlog2.f32 %v323_v27  ;;  %v389_v43 = vmul.f32 0.6931472, %v733_v22 }
  0x8c   : > { %v737_v32 = vpop.eup %736  ;;  %v364_v33 = vsub.f32 %v360_v23, %v1084_v49  ;;  %v361_v34 = vmul.f32 %v606_v18, %v355_v24  ;;  %v391_v60 = vmul.f32 0.6931472, %v735_v28  ;;  %v412_v23 = vstv %s1128_s7 }
  0x8d   : > { %v739_v35 = vpop.eup %738  ;;  %v344_v36 = vmul.f32 %v725_v10, %v340_v30  ;;  %v341_v37 = vsub.f32 0.083333336, %v337_v31  ;;  %v377_v40 = vmul.f32 0.6931472, %v737_v32  ;;  %v427_v24 = vmul.f32 %v1131_v44, %v1027_v1 }
  0x8e   : > { %v741_v25 = vpop.eup %740  ;;  %v368_v39 = vadd.f32 0.9189385, %v364_v33  ;;  %v365_v41 = vsub.f32 %v361_v34, %v1088_v51  ;;  %v379_v53 = vmul.f32 0.6931472, %v739_v35  ;;  %v431_v33 = vadd.f32 %v430_v15, %v426_v4 }
  0x8f   : > { %v743_v42 = vpop.eup %742  ;;  %v345_v45 = vmul.f32 %v729_v16, %v341_v37  ;;  %v334_v29 = vmul.f32 %v741_v25, %v741_v25  ;;  %v432_v1 = vadd.f32 %v430_v15, %v427_v24 }
  0x90   : > { %v745_v48 = vpop.eup %744  ;;  %v372_v49 = vadd.f32 %v368_v39, %v344_v36  ;;  %v369_v50 = vadd.f32 0.9189385, %v365_v41  ;;  %v357_v54 = vmul.f32 0.6931472, %v743_v42 }
  0x91   : > { %v747_v55 = vpop.eup %746  ;;  %v338_v56 = vmul.f32 0.0027777778, %v334_v29  ;;  %v381_v17 = vmul.f32 0.6931472, %v745_v48 }
  0x92   : > { %v749_v51 = vpop.eup %748  ;;  %v384_v58 = vsub.f32 %v372_v49, %v377_v40  ;;  %v373_v59 = vadd.f32 %v369_v50, %v345_v45  ;;  %v362_v61 = vmul.f32 %v607_v38, %v357_v54  ;;  %v393_v26 = vmul.f32 0.6931472, %v747_v55  ;;  %v406_v45 = vld [vmem:[#allocation2 + $0x10] sm:$0xff]  ;;  %v407_v55 = vld [vmem:[#allocation2 + $0x18] sm:$0xff] }
  0x93   : > { %v751_v63 = vpop.eup %750  ;;  %v342_v6 = vsub.f32 0.083333336, %v338_v56  ;;  %v335_v7 = vmul.f32 %v749_v51, %v749_v51  ;;  %v433_v54 = vadd.f32 %v430_v15, %v428_v46  ;;  %v429_v56 = vmul.f32 %v1131_v44, %v1034_v3 }
  0x94   : > { %v396_v8 = vsub.f32 %v384_v58, %v389_v43  ;;  %v385_v10 = vsub.f32 %v373_v59, %v379_v53  ;;  %v366_v12 = vsub.f32 %v362_v61, %v1102_v62  ;;  %v359_v13 = vmul.f32 0.6931472, %v751_v63  ;;  %v753_v19 = vpop.eup %752 }
  0x95   : > { %v346_v16 = vmul.f32 %v741_v25, %v342_v6  ;;  %v339_v18 = vmul.f32 0.0027777778, %v335_v7  ;;  %v755_v28 = vpop.eup %754  ;;  %v383_v35 = vmul.f32 0.6931472, %v753_v19 }
  0x96   : > { %v400_v20 = vsub.f32 0.0, %v396_v8  ;;  %v397_v21 = vsub.f32 %v385_v10, %v391_v60  ;;  %v370_v11 = vadd.f32 0.9189385, %v366_v12  ;;  %v363_v22 = vmul.f32 %v608_v57, %v359_v13 }
  0x97   : > { %v343_v27 = vsub.f32 0.083333336, %v339_v18  ;;  %v395_v39 = vmul.f32 0.6931472, %v755_v28  ;;  %v434_v60 = vadd.f32 %v430_v15, %v429_v56 }
  0x98   : > { %v408_v62 = vadd.f32 %v404_v14, %v400_v20  ;;  %v401_v30 = vsub.f32 0.0, %v397_v21  ;;  %v374_v31 = vadd.f32 %v370_v11, %v346_v16  ;;  %v367_v32 = vsub.f32 %v363_v22, %v1111_v9 }
  0x99   : > { %v347_v34 = vmul.f32 %v749_v51, %v343_v27 }
  0x9a   : > { %v413_v36 = vadd.f32 %v412_v23, %v408_v62  ;;  %v409_v37 = vadd.f32 %v405_v0, %v401_v30  ;;  %v386_v38 = vsub.f32 %v374_v31, %v381_v17  ;;  %v371_v25 = vadd.f32 0.9189385, %v367_v32 }
  0x9c   : > { %v421_v40 = vsel %vm417_vm0, 0.0, %v413_v36  ;;  %v414_v41 = vadd.f32 %v412_v23, %v409_v37  ;;  %v398_v42 = vsub.f32 %v386_v38, %v393_v26  ;;  %v375_v43 = vadd.f32 %v371_v25, %v347_v34 }
  0x9d   : > { %v435_v9 = vsub.f32 %v431_v33, %v421_v40 }
  0x9e   : > { %v422_v29 = vsel %vm418_vm1, 0.0, %v414_v41  ;;  %v402_v48 = vsub.f32 0.0, %v398_v42  ;;  %v387_v49 = vsub.f32 %v375_v43, %v383_v35 }
  0x9f   : > { %439 = vst [vmem:[%s1036_s28] sm:$0xff] %v435_v9  ;;  %v436_v50 = vsub.f32 %v432_v1, %v422_v29 }
  0xa0   : > { %v410_v53 = vadd.f32 %v406_v45, %v402_v48  ;;  %v399_v47 = vsub.f32 %v387_v49, %v395_v39 }
  0xa1   : > { %440 = vst [vmem:[%s1036_s28 + $0x8] sm:$0xff] %v436_v50 }
  0xa2   : > { %v415_v57 = vadd.f32 %v412_v23, %v410_v53  ;;  %v403_v51 = vsub.f32 0.0, %v399_v47 }
  0xa4   : > { %v423_v2 = vsel %vm419_vm2, 0.0, %v415_v57  ;;  %v411_v58 = vadd.f32 %v407_v55, %v403_v51 }
  0xa5   : > { %v437_v59 = vsub.f32 %v433_v54, %v423_v2 }
  0xa6   : > { %v416_v61 = vadd.f32 %v412_v23, %v411_v58 }
  0xa7   : > { %441 = vst [vmem:[%s1036_s28 + $0x10] sm:$0xff] %v437_v59 }
  0xa8   : > { %v424_v63 = vsel %vm420_vm3, 0.0, %v416_v61 }
  0xa9   : > { %v438_v4 = vsub.f32 %v434_v60, %v424_v63 }
  0xab   : > { %442 = vst [vmem:[%s1036_s28 + $0x18] sm:$0xff] %v438_v4 }
  0xac PF: > { %v447_v52 = vlaneseq  ;;  %s474_s8 = scalar_select %p175_p4, 0.0, -1000000.0  ;;  %v475_v15 = vld [vmem:[%s1036_s28] sm:$0xff]  ;;  %v476_v17 = vld [vmem:[%s1036_s28 + $0x8] sm:$0xff] }
  0xad   : > { %s614_s15 = sshll.u32 %s877_s12, 9  ;;  %s505_s16 = sshll.u32 %s1036_s28, 4  ;;  %s1169_s16 = int_to_ptr.vmem [resolvable:$true] %s505_s16 }
  0xae   : > { %v448_v6 = vshrl.u32 %v447_v52, 7  ;;  %v450_v7 = vand.u32 127, %v447_v52  ;;  %v479_v16 = vstv %s474_s8  ;;  %v477_v18 = vld [vmem:[%s1036_s28 + $0x10] sm:$0xff]  ;;  %s1167_s25 = scalar_lea.hbm %s1220_s2, %s614_s15  ;;  %s489_s12 = scalar_lea.sflag [#allocation5], %s168_s27 }
  0xaf   : > { %s799_s26 = scalar_lea.vmem %s1169_s16, 512  ;;  %p1227_p13 = scmp.ne.s32.totalorder %s1222_s19, 0 }
  0xb0   : > { %v457_v3 = vmul.u32 512, %v448_v6  ;;  %v451_v44 = vadd.s32 128, %v450_v7  ;;  %v452_v8 = vadd.s32 256, %v450_v7  ;;  %v453_v5 = vadd.s32 384, %v450_v7  ;;  %p800_p11 = scmp.ne.s32.totalorder %s1169_s16, %s799_s26  ;;  %s890_s23 = smov [#allocation8]  }
  0xb1   : > { %s803_s24 = sshll.u32 %s890_s23, 4  ;;  %s804_s24 = int_to_ptr.vmem [resolvable:$false] %s803_s24 }
  0xb2   : > { %v458_v10 = vadd.s32 %v457_v3, %v450_v7  ;;  %v459_v12 = vadd.s32 %v457_v3, %v451_v44  ;;  %v460_v13 = vadd.s32 %v457_v3, %v452_v8  ;;  %v461_v14 = vadd.s32 %v457_v3, %v453_v5  ;;  %v478_v20 = vld [vmem:[%s1036_s28 + $0x18] sm:$0xff]  ;;  %p801_p1 = pnand %p800_p11, %p1227_p13  ;;  %s805_s29 = scalar_lea.vmem %s804_s24, 1024 }
  0xb3   : > { %p806_p3 = scmp.lt.s32.totalorder %s1169_s16, %s804_s24  ;;  %p807_p5 = scmp.lt.s32.totalorder %s805_s29, %s799_s26 }
  0xb4   : > { %vm462_vm4 = vcmp.eq.s32.totalorder %v458_v10, 0  ;;  %vm466_vm5 = vcmp.eq.s32.totalorder %v458_v10, 15  ;;  %vm463_vm6 = vcmp.eq.s32.totalorder %v459_v12, 0  ;;  %vm467_vm7 = vcmp.eq.s32.totalorder %v459_v12, 15  ;;  %p802_p2 = pneg %p801_p1 }
  0xb5   : > { %vm470_vm8 = vmor %vm462_vm4, %vm466_vm5  ;;  %vm464_vm9 = vcmp.eq.s32.totalorder %v460_v13, 0  ;;  %vm468_vm10 = vcmp.eq.s32.totalorder %v460_v13, 15  ;;  %vm465_vm11 = vcmp.eq.s32.totalorder %v461_v14, 0  ;;  %vm469_vm12 = vcmp.eq.s32.totalorder %v461_v14, 15  ;;  %p808_p6 = por %p807_p5, %p806_p3 }
  0xb6   : > { %v480_v19 = vsel %vm470_vm8, %v479_v16, %v475_v15  ;;  %vm471_vm13 = vmor %vm463_vm6, %vm467_vm7 }
  0xb7   : > { %484 = vst [vmem:[%s1036_s28] sm:$0xff] %v480_v19  ;;  %v481_v21 = vsel %vm471_vm13, %v479_v16, %v476_v17  ;;  %vm472_vm14 = vmor %vm464_vm9, %vm468_vm10  ;;  %p809_p7 = pnand %p808_p6, %p802_p2 }
  0xb8   : > { %485 = vst [vmem:[%s1036_s28 + $0x8] sm:$0xff] %v481_v21  ;;  %v482_v11 = vsel %vm472_vm14, %v479_v16, %v477_v18  ;;  %vm473_vm15 = vmor %vm465_vm11, %vm469_vm12 }
  0xb9   : > { %486 = vst [vmem:[%s1036_s28 + $0x10] sm:$0xff] %v482_v11  ;;  %v483_v22 = vsel %vm473_vm15, %v479_v16, %v478_v20 }
  0xba   : > { %487 = vst [vmem:[%s1036_s28 + $0x18] sm:$0xff] %v483_v22 }
  0xbb   : > { %812 = shalt.err (!%p809_p7)
}
  0xbc   : > { %s813_s27 = scalar_lea.hbm %s1167_s25, 512  ;;  %s817_s3 = scalar_lea.hbm %s1220_s2, 2560 }
  0xbd   : > { %p814_p9 = scmp.ne.s32.totalorder %s1167_s25, %s813_s27  ;;  %p818_p4 = scmp.lt.u32.totalorder %s1167_s25, %s1220_s2 }
  0xbe   : > { %p819_p8 = scmp.lt.u32.totalorder %s817_s3, %s813_s27  ;;  %p821_p11 = scmp.lt.u32.totalorder %s813_s27, %s1167_s25 }
  0xbf   : > { %p815_p12 = pnand %p814_p9, %p1227_p13 }
  0xc0   : > { %p820_p10 = por %p819_p8, %p818_p4 }
  0xc1   : > { %p816_p0 = pneg %p815_p12 }
  0xc2   : > { %p822_p1 = por %p821_p11, %p820_p10 }
  0xc4   : > { %p823_p2 = pnand %p822_p1, %p816_p0 }
  0xc6   : > { %826 = shalt.err (!%p823_p2)
}
  0xc7   : > { %623 = dma.vmem_to_hbm [thread:$0]  (%p1227_p13), %s1169_s16, 512, %s1167_s25, %s489_s12  }
  0xc8 PF: > { %p640_p3 = scmp.ge.s32.totalorder %s885_s14, 2  ;;  %s517_s6 = sand.u32 1, %s865_s9  }
  0xc9   : > { %p1228_p5 = scmp.ne.s32.totalorder %s1223_s21, 0  ;;  %s518_s7 = scalar_lea.sflag [#allocation5], %s517_s6 }
  0xcb   : > { %p633_p6 = pnand %p640_p3, %p1228_p5 }
  0xcd   : > { %860 = dma.done.wait (!%p633_p6), %s518_s7, 512  }
  0xce   : > { %862 = vsyncadd (!%p633_p6), %s518_s7, 4294966784  ;;  %s17_s14 = sadd.s32 1, %s885_s14   ;;  %s1229_s9 = smov %s869_s10 }
  0xcf   : > { %p14_p7 = scmp.ge.s32.totalorder %s17_s14, 7   ;;  %s1230_s10 = smov %s873_s11 }
  0xd0   : > { %s1231_s11 = smov %s959_s22  ;;  %s1232_s12 = smov %s881_s13 }
  0xd1   : > { %s1233_s13 = smov %s1235_s17  ;;  %16 = sbr.rel (!%p14_p7) target bundleno = 6 (0x6), region = 83 }
  0xd8   :  { %523 = vsyncpa [#allocation4], 1 }
  0xd9   :  { %525 = vsyncpa [#allocation4 + $0x1], 1 }
  0xda   :  { %526 = vsyncpa [#allocation5], 1 }
  0xdb   :  { %528 = vsyncpa [#allocation5 + $0x1], 1 }
  0xdc   :  { %529 = vsyncpa [#allocation6], 1 }
  0xdd   :  { %531 = vsyncpa [#allocation6 + $0x1], 1 }

</bundles_post_ra>
